<compile_context>
chip_gen: v7x
topology: tpu7x:2x2x1
jax: 0.10.0
libtpu: 0.0.40
codegen_flags: <defaults>
</compile_context>

<pallas_src>
import functools

import jax
import jax.numpy as jnp
from jax.experimental import pallas as pl
from jax.experimental.pallas import tpu as pltpu


def lstm_fc_kernel(x_ref, wih_ref, bias_ref, wfc_ref, bfc_ref, out_ref, *, hidden_size):
    """One LSTM-cell step (zero initial state) + linear head, fully in VMEM.

    x_ref:    (TB, D)   f32/bf16  input rows for this batch tile (cast to bf16 at the dot)
    wih_ref:  (D, 3H)   bf16      W_ih^T, gate columns reordered to i | o | g (forget dropped)
    bias_ref: (1, 3H)   f32       (b_ih + b_hh), i | o | g blocks
    wfc_ref:  (H, Cp)   bf16      fc weight^T, zero-padded to lane-dense Cp (multiple of 128)
    bfc_ref:  (1, Cp)   f32       fc bias, zero-padded
    out_ref:  (TB, Cp)  f32       padded logits (caller slices [:, :C])
    """
    H = hidden_size

    x = x_ref[...].astype(jnp.bfloat16)
    # gates = x @ W_ih^T + (b_ih + b_hh); bf16 operands, f32 MXU accumulation.
    gates = jnp.dot(x, wih_ref[...], preferred_element_type=jnp.float32) + bias_ref[...]

    # Columns are pre-ordered i | o | g, so both sigmoids are one contiguous, lane-aligned
    # EUP call; tanh takes the remaining 128-aligned block.
    sig = jax.nn.sigmoid(gates[:, 0:2 * H])
    i_g = sig[:, 0:H]
    o_g = sig[:, H:2 * H]
    g_g = jnp.tanh(gates[:, 2 * H:3 * H])

    # c0 == 0  =>  c = i*g  (forget gate multiplies c0 and was removed entirely)
    h = o_g * jnp.tanh(i_g * g_g)

    out_ref[...] = (
        jnp.dot(h.astype(jnp.bfloat16), wfc_ref[...], preferred_element_type=jnp.float32)
        + bfc_ref[...]
    ).astype(out_ref.dtype)


def _choose_batch_tile(B):
    """Pick the batch-tile size TB (multiple of 8).

    Big tiles amortize the ~0.35 us per-grid-step overhead; whenever the batch exceeds
    one small tile we emit at least 2 balanced tiles so the "parallel" grid axis really
    lands on both v7x TensorCores (no effect on single-TC v5e/v6e).
    """
    def rup8(n):
        return ((n + 7) // 8) * 8

    if B <= 128:
        return rup8(max(B, 8))        # tiny batch: one tile, grid of 1
    if B <= 1024:
        return rup8((B + 1) // 2)     # two balanced tiles
    return 512                        # large batch: 512-row tiles


def lstm_model_forward(x, params, *, weight_dtype=jnp.bfloat16, x_buffer_count=2):
    """Wrapper: parameter layout prep (glue) + the Pallas kernel call.

    Pass x in bf16 if the producer can emit it (kernel casts at the dot either way);
    pass x_buffer_count=3 on v5e to deepen the x pipeline.
    """
    w_ih, b_ih, w_hh, b_hh, w_fc, b_fc = (
        params["w_ih"], params["b_ih"], params["w_hh"], params["b_hh"],
        params["w_fc"], params["b_fc"],
    )
    B, D = x.shape
    H = w_ih.shape[0] // 4
    C = w_fc.shape[0]

    # --- weight prep: drop the dead forget-gate columns (they multiply c0 == 0) and
    #     reorder the survivors to i | o | g so the kernel sigmoids one contiguous slab.
    w_ihT = w_ih.T                                                   # (D, 4H): i | f | g | o
    wih_iog = jnp.concatenate(
        [w_ihT[:, 0:H], w_ihT[:, 3 * H:4 * H], w_ihT[:, 2 * H:3 * H]],
        axis=1).astype(weight_dtype)                                 # (D, 3H): i | o | g
    bias = (b_ih + b_hh).astype(jnp.float32)
    bias_iog = jnp.concatenate(
        [bias[0:H], bias[3 * H:4 * H], bias[2 * H:3 * H]]).reshape(1, 3 * H)

    # --- fc head: pad output columns to a lane-dense multiple of 128 (unmasked stores).
    C_pad = max(128, ((C + 127) // 128) * 128)
    wfc_t = jnp.zeros((H, C_pad), weight_dtype).at[:, :C].set(w_fc.T.astype(weight_dtype))
    bfc = jnp.zeros((1, C_pad), jnp.float32).at[0, :C].set(b_fc.astype(jnp.float32))

    # --- batch tiling: pad rows to a multiple of the tile, tile across a parallel grid.
    TB = _choose_batch_tile(B)
    B_pad = ((B + TB - 1) // TB) * TB
    if B_pad != B:
        x = jnp.zeros((B_pad, D), x.dtype).at[:B].set(x)

    kernel = functools.partial(lstm_fc_kernel, hidden_size=H)

    out = pl.pallas_call(
        kernel,
        out_shape=jax.ShapeDtypeStruct((B_pad, C_pad), jnp.float32),
        grid=(B_pad // TB,),
        in_specs=[
            # x: tiled over batch; dominant HBM stream -> keep it multi-buffered.
            pl.BlockSpec((TB, D), lambda i: (i, 0),
                         pipeline_mode=pl.Buffered(x_buffer_count)),
            # constant-index weights / biases: fetched once, single buffer saves VMEM.
            pl.BlockSpec((D, 3 * H), lambda i: (0, 0), pipeline_mode=pl.Buffered(1)),
            pl.BlockSpec((1, 3 * H), lambda i: (0, 0), pipeline_mode=pl.Buffered(1)),
            pl.BlockSpec((H, C_pad), lambda i: (0, 0), pipeline_mode=pl.Buffered(1)),
            pl.BlockSpec((1, C_pad), lambda i: (0, 0), pipeline_mode=pl.Buffered(1)),
        ],
        out_specs=pl.BlockSpec((TB, C_pad), lambda i: (i, 0)),
        compiler_params=pltpu.CompilerParams(
            dimension_semantics=("parallel",),
            vmem_limit_bytes=24 << 20,
        ),
    )(x, wih_iog, bias_iog, wfc_t, bfc)

    return out[:B, :C]


def init_params(key, input_size, hidden_size, num_classes):
    """Deterministic synthetic parameters matching nn.LSTM / nn.Linear shapes."""
    k = jax.random.split(key, 6)
    scale = 0.1
    return {
        "w_ih": scale * jax.random.normal(k[0], (4 * hidden_size, input_size), jnp.float32),
        "b_ih": scale * jax.random.normal(k[1], (4 * hidden_size,), jnp.float32),
        "w_hh": scale * jax.random.normal(k[2], (4 * hidden_size, hidden_size), jnp.float32),
        "b_hh": scale * jax.random.normal(k[3], (4 * hidden_size,), jnp.float32),
        "w_fc": scale * jax.random.normal(k[4], (num_classes, hidden_size), jnp.float32),
        "b_fc": scale * jax.random.normal(k[5], (num_classes,), jnp.float32),
    }


def reference_forward_f32(x, params):
    """Pure-JAX f32 reference mirroring the PyTorch LSTM cell math (seq_len=1, zero state)."""
    H = params["w_hh"].shape[1]
    gates = x @ params["w_ih"].T + params["b_ih"] + params["b_hh"]
    i = jax.nn.sigmoid(gates[:, 0 * H:1 * H])
    g = jnp.tanh(gates[:, 2 * H:3 * H])
    o = jax.nn.sigmoid(gates[:, 3 * H:4 * H])
    h = o * jnp.tanh(i * g)
    return h @ params["w_fc"].T + params["b_fc"]


def reference_forward_bf16(x, params):
    """Same math with bf16 weight/activation operands and f32 accumulation (kernel's path)."""
    H = params["w_hh"].shape[1]
    gates = jnp.dot(x.astype(jnp.bfloat16), params["w_ih"].T.astype(jnp.bfloat16),
                    preferred_element_type=jnp.float32)
    gates = gates + params["b_ih"] + params["b_hh"]
    i = jax.nn.sigmoid(gates[:, 0 * H:1 * H])
    g = jnp.tanh(gates[:, 2 * H:3 * H])
    o = jax.nn.sigmoid(gates[:, 3 * H:4 * H])
    h = o * jnp.tanh(i * g)
    out = jnp.dot(h.astype(jnp.bfloat16), params["w_fc"].T.astype(jnp.bfloat16),
                  preferred_element_type=jnp.float32)
    return out + params["b_fc"]


if __name__ == "__main__":
    # Small shapes consistent with the module (reduced from the 768/128/2 defaults).
    B, D, H, C = 8, 256, 128, 2

    key = jax.random.PRNGKey(0)
    kx, kp = jax.random.split(key)
    x = jax.random.normal(kx, (B, D), jnp.float32)
    params = init_params(kp, D, H, C)

    out = lstm_model_forward(x, params)
    out = jax.block_until_ready(out)
    assert out.shape == (B, C)

    # Tight check vs a bf16-weight / f32-accumulate reference (kernel's numerical path).
    ref_bf16 = reference_forward_bf16(x, params)
    assert jnp.allclose(out, ref_bf16, atol=2e-3, rtol=2e-3), "mismatch vs bf16 reference"

    # Loose check vs the pure-f32 reference (bf16 weight quantization error only).
    ref_f32 = reference_forward_f32(x, params)
    assert jnp.allclose(out, ref_f32, atol=5e-2, rtol=5e-2), "mismatch vs f32 reference"

    print("KERNEL_OK")
</pallas_src>

<mosaic_0001>
module attributes {stable_mosaic.version = 11 : i64} {
  func.func @lstm_fc_kernel(%arg0: i32, %arg1: memref<8x256xf32, #tpu.memory_space<vmem>>, %arg2: memref<256x384xbf16, #tpu.memory_space<vmem>>, %arg3: memref<1x384xf32, #tpu.memory_space<vmem>>, %arg4: memref<128x128xbf16, #tpu.memory_space<vmem>>, %arg5: memref<1x128xf32, #tpu.memory_space<vmem>>, %arg6: memref<8x128xf32, #tpu.memory_space<vmem>>) attributes {dimension_semantics = [#tpu.dimension_semantics<parallel>], iteration_bounds = array<i64: 1>, scalar_prefetch = 0 : i64, scratch_operands = 0 : i64, tpu.core_type = #tpu.core_type<tc>, window_params = [{pipeline_mode = #tpu.pipeline_mode<double_buffered>, transform_indices = @transform_0, window_bounds = array<i64: 8, 256>}, {pipeline_mode = #tpu.pipeline_mode<synchronous>, transform_indices = @transform_1, window_bounds = array<i64: 256, 384>}, {pipeline_mode = #tpu.pipeline_mode<synchronous>, transform_indices = @transform_2, window_bounds = array<i64: 1, 384>}, {pipeline_mode = #tpu.pipeline_mode<synchronous>, transform_indices = @transform_3, window_bounds = array<i64: 128, 128>}, {pipeline_mode = #tpu.pipeline_mode<synchronous>, transform_indices = @transform_4, window_bounds = array<i64: 1, 128>}, {transform_indices = @transform_5, window_bounds = array<i64: 8, 128>}]} {
    %c0 = arith.constant 0 : index
    %c0_0 = arith.constant 0 : index
    %0 = vector.load %arg1[%c0, %c0_0] : memref<8x256xf32, #tpu.memory_space<vmem>>, vector<8x256xf32>
    %1 = arith.truncf %0 : vector<8x256xf32> to vector<8x256xbf16>
    %c0_1 = arith.constant 0 : index
    %c0_2 = arith.constant 0 : index
    %2 = vector.load %arg2[%c0_1, %c0_2] : memref<256x384xbf16, #tpu.memory_space<vmem>>, vector<256x384xbf16>
    %cst = arith.constant dense<0.000000e+00> : vector<8x384xf32>
    %3 = tpu.matmul %1, %2, %cst {dimension_numbers = #tpu.dot_dimension_numbers<[1], [0], [0], [1], [0, 0, 1, 1], [], []>} : vector<8x256xbf16>, vector<256x384xbf16>, vector<8x384xf32> -> vector<8x384xf32>
    %c0_3 = arith.constant 0 : index
    %c0_4 = arith.constant 0 : index
    %4 = vector.load %arg3[%c0_3, %c0_4] : memref<1x384xf32, #tpu.memory_space<vmem>>, vector<1x384xf32>
    %5 = vector.broadcast %4 : vector<1x384xf32> to vector<8x384xf32>
    %6 = arith.addf %3, %5 : vector<8x384xf32>
    %7 = vector.extract_strided_slice %6 {offsets = [0, 0], sizes = [8, 256], strides = [1, 1]} : vector<8x384xf32> to vector<8x256xf32>
    %8 = arith.negf %7 : vector<8x256xf32>
    %9 = math.exp %8 : vector<8x256xf32>
    %cst_5 = arith.constant 1.000000e+00 : f32
    %10 = vector.broadcast %cst_5 : f32 to vector<8x256xf32>
    %11 = arith.addf %10, %9 : vector<8x256xf32>
    %12 = arith.divf %10, %11 : vector<8x256xf32>
    %13 = vector.extract_strided_slice %12 {offsets = [0, 0], sizes = [8, 128], strides = [1, 1]} : vector<8x256xf32> to vector<8x128xf32>
    %14 = vector.extract_strided_slice %12 {offsets = [0, 128], sizes = [8, 128], strides = [1, 1]} : vector<8x256xf32> to vector<8x128xf32>
    %15 = vector.extract_strided_slice %6 {offsets = [0, 256], sizes = [8, 128], strides = [1, 1]} : vector<8x384xf32> to vector<8x128xf32>
    %16 = math.tanh %15 : vector<8x128xf32>
    %17 = arith.mulf %13, %16 : vector<8x128xf32>
    %18 = math.tanh %17 : vector<8x128xf32>
    %19 = arith.mulf %14, %18 : vector<8x128xf32>
    %20 = arith.truncf %19 : vector<8x128xf32> to vector<8x128xbf16>
    %c0_6 = arith.constant 0 : index
    %c0_7 = arith.constant 0 : index
    %21 = vector.load %arg4[%c0_6, %c0_7] : memref<128x128xbf16, #tpu.memory_space<vmem>>, vector<128x128xbf16>
    %cst_8 = arith.constant dense<0.000000e+00> : vector<8x128xf32>
    %22 = tpu.matmul %20, %21, %cst_8 {dimension_numbers = #tpu.dot_dimension_numbers<[1], [0], [0], [1], [0, 0, 1, 1], [], []>} : vector<8x128xbf16>, vector<128x128xbf16>, vector<8x128xf32> -> vector<8x128xf32>
    %c0_9 = arith.constant 0 : index
    %c0_10 = arith.constant 0 : index
    %23 = vector.load %arg5[%c0_9, %c0_10] : memref<1x128xf32, #tpu.memory_space<vmem>>, vector<1x128xf32>
    %24 = vector.broadcast %23 : vector<1x128xf32> to vector<8x128xf32>
    %25 = arith.addf %22, %24 : vector<8x128xf32>
    %c0_11 = arith.constant 0 : index
    %c0_12 = arith.constant 0 : index
    %26 = vector.load %arg6[%c0_11, %c0_12] : memref<8x128xf32, #tpu.memory_space<vmem>>, vector<8x128xf32>
    tpu.vector_store %arg6[%c0_11, %c0_12], %25 {strides = array<i32>} : memref<8x128xf32, #tpu.memory_space<vmem>>, vector<8x128xf32>,
    return
  }
  func.func @transform_0(%arg0: i32) -> (i32, i32) {
    %c0_i32 = arith.constant 0 : i32
    %c0_i32_0 = arith.constant 0 : i32
    return %arg0, %c0_i32 : i32, i32
  }
  func.func @transform_1(%arg0: i32) -> (i32, i32) {
    %c0_i32 = arith.constant 0 : i32
    %c0_i32_0 = arith.constant 0 : i32
    %c0_i32_1 = arith.constant 0 : i32
    return %c0_i32, %c0_i32_0 : i32, i32
  }
  func.func @transform_2(%arg0: i32) -> (i32, i32) {
    %c0_i32 = arith.constant 0 : i32
    %c0_i32_0 = arith.constant 0 : i32
    %c0_i32_1 = arith.constant 0 : i32
    return %c0_i32, %c0_i32_0 : i32, i32
  }
  func.func @transform_3(%arg0: i32) -> (i32, i32) {
    %c0_i32 = arith.constant 0 : i32
    %c0_i32_0 = arith.constant 0 : i32
    %c0_i32_1 = arith.constant 0 : i32
    return %c0_i32, %c0_i32_0 : i32, i32
  }
  func.func @transform_4(%arg0: i32) -> (i32, i32) {
    %c0_i32 = arith.constant 0 : i32
    %c0_i32_0 = arith.constant 0 : i32
    %c0_i32_1 = arith.constant 0 : i32
    return %c0_i32, %c0_i32_0 : i32, i32
  }
  func.func @transform_5(%arg0: i32) -> (i32, i32) {
    %c0_i32 = arith.constant 0 : i32
    %c0_i32_0 = arith.constant 0 : i32
    return %arg0, %c0_i32 : i32, i32
  }
}

</mosaic_0001>

<bundles_post_ra>
// kernel: tpu_custom_call.1
= control target key start
LH: loop header
LB: loop body
LE: loop exit
PB: predicated region body
PF: predicated region fallthrough
CT: control target
= control target key end

     0   :  { %10 = vsyncpa [#allocation3], 0  ;;  %s1020_s0 = inlined_call_operand.hbm [shape: f32[8,256], index: 0, kind: input, shape index: {}]   ;;  %s1021_s1 = inlined_call_operand.hbm [shape: bf16[256,384], index: 1, kind: input, shape index: {}]   ;;  %s1022_s2 = inlined_call_operand.vmem [shape: f32[1,384], index: 2, kind: input, shape index: {}]   ;;  %s1023_s3 = inlined_call_operand.hbm [shape: bf16[128,128], index: 3, kind: input, shape index: {}]   ;;  %s1024_s4 = inlined_call_operand.vmem [shape: f32[1,128], index: 4, kind: input, shape index: {}]   ;;  %s1025_s5 = inlined_call_operand.hbm [shape: f32[8,128], index: 5, kind: output, shape index: {}]  }
   0x1   :  { %11 = vsyncpa [#allocation6], 0 }
   0x2   :  { %12 = vsyncpa [#allocation4], 0  ;;  %s926_s18 = smov [#allocation5]   ;;  %s832_s22 = scalar_lea.hbm %s1021_s1, 6144 }
   0x3   :  { %s28_s19 = sshll.u32 %s926_s18, 4  ;;  %p833_p0 = scmp.ne.s32.totalorder %s1021_s1, %s832_s22  ;;  %s29_s19 = int_to_ptr.vmem [resolvable:$true] %s28_s19 }
   0x4   :  { %p836_p1 = scmp.lt.u32.totalorder %s832_s22, %s1021_s1 }
   0x6   :  { %p838_p2 = pnand %p836_p1, %p833_p0 }
   0x8   :  { %841 = shalt.err (!%p838_p2)
}
   0x9   :  { %s842_s27 = scalar_lea.vmem %s29_s19, 6144  ;;  %p847_p4 = scmp.lt.s32.totalorder %s29_s19, %s29_s19 }
   0xa   :  { %p843_p3 = scmp.ne.s32.totalorder %s29_s19, %s842_s27  ;;  %p848_p5 = scmp.lt.s32.totalorder %s842_s27, %s842_s27 }
   0xc   :  { %p849_p6 = por %p848_p5, %p847_p4 }
   0xe   :  { %p850_p7 = pnand %p849_p6, %p843_p3 }
  0x10   :  { %853 = shalt.err (!%p850_p7)
}
  0x11   :  { %s927_s28 = smov 192   ;;  %s928_s29 = smov 12  }
  0x12   :  { %34 = dma.hbm_to_vmem [thread:$0]  %s1021_s1, 6144, %s29_s19, [#allocation6], %s927_s28, %s927_s28, %s928_s29  }
  0x13   :  { %s929_s7 = smov [#allocation2]   ;;  %s930_s9 = smov [#allocation7]  }
  0x14   :  { %s19_s8 = sshll.u32 %s929_s7, 4  ;;  %s42_s10 = sshll.u32 %s930_s9, 4  ;;  %s20_s8 = int_to_ptr.vmem [resolvable:$true] %s19_s8  ;;  %s43_s10 = int_to_ptr.vmem [resolvable:$true] %s42_s10 }
  0x15   :  { %s854_s13 = scalar_lea.hbm %s1020_s0, 256 }
  0x16   :  { %p855_p8 = scmp.ne.s32.totalorder %s1020_s0, %s854_s13  ;;  %p858_p9 = scmp.lt.u32.totalorder %s854_s13, %s1020_s0 }
  0x18   :  { %p860_p10 = pnand %p858_p9, %p855_p8 }
  0x1a   :  { %863 = shalt.err (!%p860_p10)
}
  0x1b   :  { %s864_s1 = scalar_lea.vmem %s20_s8, 256  ;;  %p869_p12 = scmp.lt.s32.totalorder %s20_s8, %s20_s8 }
  0x1c   :  { %p865_p11 = scmp.ne.s32.totalorder %s20_s8, %s864_s1  ;;  %p870_p13 = scmp.lt.s32.totalorder %s864_s1, %s864_s1 }
  0x1e   :  { %p871_p0 = por %p870_p13, %p869_p12 }
  0x20   :  { %p872_p1 = pnand %p871_p0, %p865_p11 }
  0x22   :  { %875 = shalt.err (!%p872_p1)
}
  0x23   :  { %22 = dma.hbm_to_vmem [thread:$0]  %s1020_s0, 256, %s20_s8, [#allocation3]  }
  0x24   :  { %s876_s22 = scalar_lea.hbm %s1023_s3, 1024 }
  0x25   :  { %p877_p2 = scmp.ne.s32.totalorder %s1023_s3, %s876_s22  ;;  %p880_p3 = scmp.lt.u32.totalorder %s876_s22, %s1023_s3 }
  0x27   :  { %p882_p4 = pnand %p880_p3, %p877_p2 }
  0x29   :  { %885 = shalt.err (!%p882_p4)
}
  0x2a   :  { %s886_s27 = scalar_lea.vmem %s43_s10, 1024  ;;  %p891_p6 = scmp.lt.s32.totalorder %s43_s10, %s43_s10 }
  0x2b   :  { %p887_p5 = scmp.ne.s32.totalorder %s43_s10, %s886_s27  ;;  %p892_p7 = scmp.lt.s32.totalorder %s886_s27, %s886_s27 }
  0x2d   :  { %p893_p8 = por %p892_p7, %p891_p6 }
  0x2f   :  { %p894_p9 = pnand %p893_p8, %p887_p5 }
  0x31   :  { %897 = shalt.err (!%p894_p9)
}
  0x32   :  { %s931_s0 = smov 64   ;;  %s932_s28 = smov 4  }
  0x33   :  { %48 = dma.hbm_to_vmem [thread:$0]  %s1023_s3, 1024, %s43_s10, [#allocation6], %s931_s0, %s931_s0, %s932_s28  }
  0x34   :  { %920 = dma.done.wait [#allocation3], 256  }
  0x35   :  { %921 = vsyncadd [#allocation3], 4294967040 }
  0x36   :  { %922 = dma.done.wait [#allocation6], 7168  }
  0x37   :  { %923 = vsyncadd [#allocation6], 4294960128  ;;  %v748_v0 = vld [vmem:[#allocation5 + $0x4] ss:$12 sps:$4 sm:$0xff]   ;;  %v750_v1 = vld [vmem:[#allocation5] ss:$12 sps:$4 sm:$0xff]   ;;  %v131_v63 = vlaneseq }
  0x38   :  { %402 = vmatprep.subr.bf16.mxu0 %v748_v0  ;;  %v751_v2 = vld [vmem:[#allocation5 + $0x1c] ss:$12 sps:$4 sm:$0xff]   ;;  %v753_v3 = vld [vmem:[#allocation5 + $0x18] ss:$12 sps:$4 sm:$0xff]   ;;  %v754_v4 = vld [vmem:[#allocation5 + $0x34] ss:$12 sps:$4 sm:$0xff]  }
  0x39   :  { %403 = vmatpush1.bf16.msra.mxu0 %v750_v1  ;;  %v756_v5 = vld [vmem:[#allocation5 + $0x30] ss:$12 sps:$4 sm:$0xff]   ;;  %v757_v6 = vld [vmem:[#allocation5 + $0x4c] ss:$12 sps:$4 sm:$0xff]   ;;  %v759_v7 = vld [vmem:[#allocation5 + $0x48] ss:$12 sps:$4 sm:$0xff]  }
  0x3a   :  { %404 = vmatprep.subr.bf16.mxu0 %v751_v2  ;;  %v760_v8 = vld [vmem:[#allocation5 + $0x64] ss:$12 sps:$4 sm:$0xff]   ;;  %v762_v9 = vld [vmem:[#allocation5 + $0x60] ss:$12 sps:$4 sm:$0xff]   ;;  %v763_v10 = vld [vmem:[#allocation5 + $0x7c] ss:$12 sps:$4 sm:$0xff]  }
  0x3b   :  { %v781_v11 = vld [vmem:[#allocation5 + $0xc8] ss:$12 sps:$4 sm:$0xff]   ;;  %v765_v13 = vld [vmem:[#allocation5 + $0x78] ss:$12 sps:$4 sm:$0xff]   ;;  %v786_v14 = vld [vmem:[#allocation5 + $0xe0] ss:$12 sps:$4 sm:$0xff]  }
  0x3c   :  { %v782_v12 = vld [vmem:[#allocation5 + $0x8] ss:$12 sps:$4 sm:$0xff]   ;;  %687 = vmatprep.subr.bf16.mxu1 %v781_v11  ;;  %v787_v15 = vld [vmem:[#allocation5 + $0x20] ss:$12 sps:$4 sm:$0xff]   ;;  %v768_v17 = vld [vmem:[#allocation5 + $0x90] ss:$12 sps:$4 sm:$0xff]  }
  0x3d   :  { %405 = vmatpush1.bf16.msra.mxu0 %v753_v3  ;;  %688 = vmatpush3.bf16.msra.mxu1 %v782_v12  ;;  %v766_v16 = vld [vmem:[#allocation5 + $0x94] ss:$12 sps:$4 sm:$0xff]   ;;  %v791_v18 = vld [vmem:[#allocation5 + $0xf8] ss:$12 sps:$4 sm:$0xff]   ;;  %v796_v21 = vld [vmem:[#allocation5 + $0x110] ss:$12 sps:$4 sm:$0xff]  }
  0x3e   :  { %406 = vmatprep.subr.bf16.mxu0 %v754_v4  ;;  %689 = vmatprep.subr.bf16.mxu1 %v786_v14  ;;  %v792_v19 = vld [vmem:[#allocation5 + $0x38] ss:$12 sps:$4 sm:$0xff]   ;;  %v797_v22 = vld [vmem:[#allocation5 + $0x50] ss:$12 sps:$4 sm:$0xff]   ;;  %v771_v23 = vld [vmem:[#allocation5 + $0xa8] ss:$12 sps:$4 sm:$0xff]  }
  0x3f   :  { %v769_v20 = vld [vmem:[#allocation5 + $0xac] ss:$12 sps:$4 sm:$0xff]   ;;  %v772_v24 = vld [vmem:[#allocation5 + $0xc4] ss:$12 sps:$4 sm:$0xff]   ;;  %v801_v25 = vld [vmem:[#allocation5 + $0x128] ss:$12 sps:$4 sm:$0xff]  }
  0x40   :  { %v774_v26 = vld [vmem:[#allocation5 + $0xc0] ss:$12 sps:$4 sm:$0xff]   ;;  %v802_v27 = vld [vmem:[#allocation5 + $0x68] ss:$12 sps:$4 sm:$0xff]   ;;  %v777_v30 = vld [vmem:[#allocation5 + $0xd8] ss:$12 sps:$4 sm:$0xff]  }
  0x41   :  { %407 = vmatpush1.bf16.msra.mxu0 %v756_v5  ;;  %690 = vmatpush3.bf16.msra.mxu1 %v787_v15  ;;  %v775_v28 = vld [vmem:[#allocation5 + $0xdc] ss:$12 sps:$4 sm:$0xff]   ;;  %v806_v29 = vld [vmem:[#allocation5 + $0x140] ss:$12 sps:$4 sm:$0xff]   ;;  %v808_v34 = vld [vmem:[#allocation5 + $0x158] ss:$12 sps:$4 sm:$0xff]  }
  0x42   :  { %408 = vmatprep.subr.bf16.mxu0 %v757_v6  ;;  %691 = vmatprep.subr.bf16.mxu1 %v791_v18  ;;  %v62_v31 = vld [vmem:[#allocation2 + $0x8] sm:$0xff]  ;;  %v807_v32 = vld [vmem:[#allocation5 + $0x80] ss:$12 sps:$4 sm:$0xff]   ;;  %v785_v41 = vld [vmem:[#allocation5 + $0x108] ss:$12 sps:$4 sm:$0xff]   ;;  %v933_v53 = vmov 0.0  }
  0x43   :  { %v64_v33 = vpack.c.bf16 %v62_v31, %v62_v31  ;;  %v778_v35 = vld [vmem:[#allocation5 + $0xf4] ss:$12 sps:$4 sm:$0xff]   ;;  %v780_v36 = vld [vmem:[#allocation5 + $0xf0] ss:$12 sps:$4 sm:$0xff]   ;;  %v809_v37 = vld [vmem:[#allocation5 + $0x98] ss:$12 sps:$4 sm:$0xff]  }
  0x44   :  { %v783_v38 = vld [vmem:[#allocation5 + $0x10c] ss:$12 sps:$4 sm:$0xff]   ;;  %v810_v39 = vld [vmem:[#allocation5 + $0x170] ss:$12 sps:$4 sm:$0xff]   ;;  %v798_v48 = vld [vmem:[#allocation5 + $0x154] ss:$12 sps:$4 sm:$0xff]  }
  0x45   :  { %409 = vmatpush1.bf16.msra.mxu0 %v759_v7  ;;  %692 = vmatpush3.bf16.msra.mxu1 %v792_v19  ;;  %v811_v40 = vld [vmem:[#allocation5 + $0xb0] ss:$12 sps:$4 sm:$0xff]   ;;  %v790_v44 = vld [vmem:[#allocation5 + $0x120] ss:$12 sps:$4 sm:$0xff]   ;;  %v795_v47 = vld [vmem:[#allocation5 + $0x138] ss:$12 sps:$4 sm:$0xff]  }
  0x46   :  { %410 = vmatprep.subr.bf16.mxu0 %v760_v8  ;;  %693 = vmatprep.subr.bf16.mxu1 %v796_v21  ;;  %v788_v42 = vld [vmem:[#allocation5 + $0x124] ss:$12 sps:$4 sm:$0xff]   ;;  %v793_v46 = vld [vmem:[#allocation5 + $0x13c] ss:$12 sps:$4 sm:$0xff]   ;;  %v803_v50 = vld [vmem:[#allocation5 + $0x16c] ss:$12 sps:$4 sm:$0xff]  }
  0x47   :  { %434 = vmatprep.mubr.bf16.mxu0 %v64_v33  ;;  %475 = vmatprep.mubr.bf16.mxu1 %v64_v33  ;;  %v61_v43 = vld [vmem:[#allocation2] sm:$0xff]  ;;  %v812_v52 = vld [vmem:[#allocation7] sm:$0xff]   ;;  %v813_v54 = vld [vmem:[#allocation7 + $0x8] sm:$0xff]   ;;  %vm934_vm0 = vmmov 0   ;;  %v132_v3 = vshrl.u32 %v131_v63, 7  ;;  %s935_s8 = smov [#allocation8]  }
  0x48   :  { %v63_v45 = vpack.c.bf16 %v61_v43, %v61_v43  ;;  %v800_v49 = vld [vmem:[#allocation5 + $0x150] ss:$12 sps:$4 sm:$0xff]   ;;  %v805_v51 = vld [vmem:[#allocation5 + $0x168] ss:$12 sps:$4 sm:$0xff]   ;;  %v816_v57 = vld [vmem:[#allocation7 + $0x20] sm:$0xff]   ;;  %s618_s9 = sshll.u32 %s935_s8, 4  ;;  %s619_s9 = int_to_ptr.vmem [resolvable:$true] %s618_s9 }
  0x49   :  { %411 = vmatpush1.bf16.msra.mxu0 %v762_v9  ;;  %694 = vmatpush3.bf16.msra.mxu1 %v797_v22  ;;  %v814_v55 = vld [vmem:[#allocation7 + $0x10] sm:$0xff]   ;;  %v815_v56 = vld [vmem:[#allocation7 + $0x18] sm:$0xff]   ;;  %v817_v58 = vld [vmem:[#allocation7 + $0x28] sm:$0xff]   ;;  %v133_v4 = vsub.s32 0, %v132_v3  ;;  %v137_v7 = vsub.s32 1, %v132_v3  ;;  %v141_v15 = vsub.s32 2, %v132_v3  ;;  %p903_p11 = scmp.lt.s32.totalorder %s619_s9, %s619_s9 }
  0x4a   :  { %412 = vmatprep.subr.bf16.mxu0 %v763_v10  ;;  %695 = vmatprep.subr.bf16.mxu1 %v801_v25  ;;  %v818_v59 = vld [vmem:[#allocation7 + $0x30] sm:$0xff]   ;;  %v819_v60 = vld [vmem:[#allocation7 + $0x38] sm:$0xff]   ;;  %s898_s10 = scalar_lea.vmem %s619_s9, 128 }
  0x4b   :  { %v129_v5 = vld [vmem:[%s1022_s2] sm:$0x7]  ;;  %p899_p10 = scmp.ne.s32.totalorder %s619_s9, %s898_s10  ;;  %p904_p12 = scmp.lt.s32.totalorder %s898_s10, %s898_s10 }
  0x4c   :  { %v134_v6 = vrot.slane %v129_v5, %v133_v4  ;;  %v138_v10 = vrot.slane %v129_v5, %v137_v7  ;;  %v678_v31 = vld [vmem:[%s1024_s4] ss:$0 sm:$0xff] }
  0x4d   :  { %413 = vmatpush1.bf16.msra.mxu0 %v765_v13  ;;  %696 = vmatpush3.bf16.msra.mxu1 %v802_v27  ;;  %p905_p13 = por %p904_p12, %p903_p11 }
  0x4e   :  { %414 = vmatprep.subr.bf16.mxu0 %v766_v16  ;;  %697 = vmatprep.subr.bf16.mxu1 %v806_v29 }
  0x4f   :  { %p906_p0 = pnand %p905_p13, %p899_p10 }
  0x51   :  { %415 = vmatpush1.bf16.msra.mxu0 %v768_v17  ;;  %698 = vmatpush3.bf16.msra.mxu1 %v807_v32  ;;  %v142_v17 = vrot.slane %v129_v5, %v141_v15 }
  0x52   :  { %416 = vmatprep.subr.bf16.mxu0 %v769_v20  ;;  %699 = vmatprep.subr.bf16.mxu1 %v808_v34 }
  0x55   :  { %417 = vmatpush1.bf16.msra.mxu0 %v771_v23  ;;  %700 = vmatpush3.bf16.msra.mxu1 %v809_v37 }
  0x56   :  { %418 = vmatprep.subr.bf16.mxu0 %v772_v24  ;;  %701 = vmatprep.subr.bf16.mxu1 %v810_v39 }
  0x59   :  { %419 = vmatpush1.bf16.msra.mxu0 %v774_v26  ;;  %702 = vmatpush3.bf16.msra.mxu1 %v811_v40 }
  0x5a   :  { %420 = vmatprep.subr.bf16.mxu0 %v775_v28  ;;  %718 = vmatprep.subr.bf16.mxu1 %v933_v53 }
  0x5c   :  { %476 = vmatmul.mubr.bf16.vlgmr.msra.gmra.mrb[0].mxu1 %v63_v45 }
  0x5d   :  { %421 = vmatpush1.bf16.msra.mxu0 %v777_v30  ;;  %719 = vmatpush3.bf16.msra.mxu1 %v812_v52 }
  0x5e   :  { %422 = vmatprep.subr.bf16.mxu0 %v778_v35  ;;  %720 = vmatprep.subr.bf16.mxu1 %v933_v53 }
  0x5f   :  { %734 = vmatprep.mubr.msk.bf16.mxu1 %vm934_vm0, %v933_v53 }
  0x61   :  { %423 = vmatpush1.bf16.msra.mxu0 %v780_v36  ;;  %721 = vmatpush3.bf16.msra.mxu1 %v813_v54 }
  0x62   :  { %424 = vmatprep.subr.bf16.mxu0 %v783_v38  ;;  %722 = vmatprep.subr.bf16.mxu1 %v933_v53 }
  0x65   :  { %425 = vmatpush1.bf16.msra.mxu0 %v785_v41  ;;  %723 = vmatpush3.bf16.msra.mxu1 %v814_v55 }
  0x66   :  { %426 = vmatprep.subr.bf16.mxu0 %v788_v42  ;;  %724 = vmatprep.subr.bf16.mxu1 %v933_v53 }
  0x69   :  { %427 = vmatpush1.bf16.msra.mxu0 %v790_v44  ;;  %725 = vmatpush3.bf16.msra.mxu1 %v815_v56 }
  0x6a   :  { %428 = vmatprep.subr.bf16.mxu0 %v793_v46  ;;  %726 = vmatprep.subr.bf16.mxu1 %v933_v53 }
  0x6d   :  { %429 = vmatpush1.bf16.msra.mxu0 %v795_v47  ;;  %727 = vmatpush3.bf16.msra.mxu1 %v816_v57 }
  0x6e   :  { %430 = vmatprep.subr.bf16.mxu0 %v798_v48  ;;  %728 = vmatprep.subr.bf16.mxu1 %v933_v53 }
  0x71   :  { %431 = vmatpush1.bf16.msra.mxu0 %v800_v49  ;;  %729 = vmatpush3.bf16.msra.mxu1 %v817_v58 }
  0x72   :  { %432 = vmatprep.subr.bf16.mxu0 %v803_v50  ;;  %730 = vmatprep.subr.bf16.mxu1 %v933_v53 }
  0x75   :  { %433 = vmatpush1.bf16.msra.mxu0 %v805_v51  ;;  %731 = vmatpush3.bf16.msra.mxu1 %v818_v59 }
  0x76   :  { %732 = vmatprep.subr.bf16.mxu1 %v933_v53 }
  0x78   :  { %435 = vmatmul.mubr.bf16.vlgmr.msra.gmra.mrb[0].mxu0 %v63_v45 }
  0x79   :  { %733 = vmatpush3.bf16.msra.mxu1 %v819_v60 }
 0x12f   :  { %v703_v61 = vpop.f32.mrb[0].mxu1 }
 0x130   :  { %v704_v62 = vpop.f32.mrb[1].mxu1 }
 0x131   :  { %v705_v0 = vadd.f32 %v704_v62, %v703_v61  ;;  %v706_v1 = vpop.f32.mrb[2].mxu1 }
 0x132   :  { %v707_v2 = vpop.f32.mrb[3].mxu1 }
 0x133   :  { %v478_v19 = vadd.f32 %v705_v0, %v142_v17 }
 0x14b   :  { %v436_v8 = vpop.f32.mrb[0].mxu0 }
 0x14c   :  { %v437_v9 = vadd.f32 %v436_v8, %v134_v6  ;;  %v438_v11 = vpop.f32.mrb[1].mxu0 }
 0x14d   :  { %v440_v12 = vpop.f32.mrb[2].mxu0  ;;  %v439_v16 = vadd.f32 %v438_v11, %v138_v10 }
 0x14e   :  { %v676_v13 = vmul.f32 -1.442695, %v437_v9  ;;  %v441_v14 = vpop.f32.mrb[3].mxu0 }
 0x14f   :  { %v677_v18 = vmul.f32 -1.442695, %v439_v16 }
 0x150   :  { %820 = vpow2.f32 %v676_v13 }
 0x151   :  { %822 = vpow2.f32 %v677_v18 }
 0x152   :  { %824 = vtanh.f32 %v478_v19 }
 0x15a   :  { %v821_v20 = vpop.eup %820 }
 0x15b   :  { %v489_v21 = vadd.f32 1.0, %v821_v20  ;;  %v823_v22 = vpop.eup %822 }
 0x15c   :  { %v825_v23 = vpop.eup %824  ;;  %v490_v24 = vadd.f32 1.0, %v823_v22 }
 0x15d   :  { %826 = vrcp.f32 %v489_v21 }
 0x15e   :  { %828 = vrcp.f32 %v490_v24 }
 0x167   :  { %v827_v25 = vpop.eup %826 }
 0x168   :  { %v496_v26 = vmul.f32 %v827_v25, %v825_v23  ;;  %v829_v27 = vpop.eup %828 }
 0x16a   :  { %830 = vtanh.f32 %v496_v26 }
 0x174   :  { %v831_v28 = vpop.eup %830 }
 0x175   :  { %v498_v29 = vmul.f32 %v831_v28, %v829_v27 }
 0x177   :  { %v499_v30 = vpack.c.bf16 %v498_v29, %v498_v29 }
 0x179   :  { %735 = vmatmul.mubr.bf16.vlgmr.msra.gmra.mrb[4].mxu1 %v499_v30 }
 0x24c   :  { %v605_v32 = vpop.f32.mrb[4].mxu1 }
 0x24d   :  { %v606_v33 = vadd.f32 %v678_v31, %v605_v32  ;;  %v736_v34 = vpop.f32.mrb[5].mxu1 }
 0x24e   :  { %v608_v35 = vpop.f32.mrb[6].mxu1 }
 0x24f   :  { %611 = vst [vmem:[#allocation8] sm:$0xff] %v606_v33  ;;  %v737_v36 = vpop.f32.mrb[7].mxu1 }
 0x250   :  { %909 = shalt.err (!%p906_p0)
}
 0x251   :  { %s910_s4 = scalar_lea.hbm %s1025_s5, 128 }
 0x252   :  { %p911_p1 = scmp.ne.s32.totalorder %s1025_s5, %s910_s4  ;;  %p914_p2 = scmp.lt.u32.totalorder %s910_s4, %s1025_s5 }
 0x254   :  { %p916_p3 = pnand %p914_p2, %p911_p1 }
 0x256   :  { %919 = shalt.err (!%p916_p3)
}
 0x257   :  { %621 = dma.vmem_to_hbm [thread:$0]  %s619_s9, 128, %s1025_s5, [#allocation4]  }
 0x258   :  { %924 = dma.done.wait [#allocation4], 128  }
 0x259   :  { %925 = vsyncadd [#allocation4], 4294967168 }
 0x25a   :  { %625 = vsyncpa [#allocation3], 1 }
 0x25b   :  { %626 = vsyncpa [#allocation6], 1 }
 0x25c   :  { %627 = vsyncpa [#allocation4], 1 }

</bundles_post_ra>
